<compile_context>
chip_gen: v7x
topology: tpu7x:2x2x1
jax: 0.10.0
libtpu: 0.0.40
codegen_flags: <defaults>
</compile_context>

<pallas_src>
import functools

import jax
import jax.numpy as jnp
from jax.experimental import pallas as pl
from jax.experimental.pallas import tpu as pltpu


# ----------------------------------------------------------------------------
# Fused Pallas kernel: the entire depth-layer circular-Conv1d stack
# ----------------------------------------------------------------------------
def _make_fused_kernel(layer_dims, K):
    """layer_dims: tuple of (cin, cout) per layer; K: kernel size (odd)."""
    assert K % 2 == 1, "circular 'same' conv requires odd kernel_size"
    assert layer_dims[0][0] == 1, "first layer must take a single input channel"
    assert layer_dims[-1][1] == 1, "last layer must produce a single output channel"
    pad = (K - 1) // 2
    depth = len(layer_dims)

    def kernel(x_ref, w_ref, b_ref, o_ref):
        # x_ref : (bn, L) f32 in VMEM (middle channel dim squeezed by BlockSpec)
        # w_ref : (total_w,) f32 in SMEM, PyTorch (Cout, Cin, K) row-major per layer
        # b_ref : (total_b,) f32 in SMEM
        # o_ref : (bn, L) f32 in VMEM (middle channel dim squeezed by BlockSpec)
        bn, L = x_ref.shape
        chans = [x_ref[...]]            # list of (bn, L) activation rows, one per channel
        w_off = 0
        b_off = 0
        for d, (cin, cout) in enumerate(layer_dims):
            last = d == depth - 1
            # Pre-roll each input channel once per tap (XLU slot; free-ish),
            # reused across all `cout` output channels.
            rolled = []
            for ci in range(cin):
                per_tap = []
                for t in range(K):
                    shift = (pad - t) % L
                    if shift == 0:
                        per_tap.append(chans[ci])
                    else:
                        per_tap.append(pltpu.roll(chans[ci], shift=shift, axis=1))
                rolled.append(per_tap)
            # VPU broadcast-FMA accumulation per output channel; bias folded in
            # as a single scalar-broadcast add (no zeros materialization).
            new_chans = []
            for co in range(cout):
                acc = None
                for ci in range(cin):
                    for t in range(K):
                        w = w_ref[w_off + (co * cin + ci) * K + t]   # SMEM scalar
                        term = rolled[ci][t] * w
                        acc = term if acc is None else acc + term
                acc = acc + b_ref[b_off + co]
                if not last:
                    acc = jnp.tanh(acc)                              # EUP slot
                new_chans.append(acc)
            chans = new_chans
            w_off += cout * cin * K
            b_off += cout
        o_ref[...] = chans[0].astype(o_ref.dtype)

    return kernel


def _choose_block_n(N):
    """Row-block size: whole batch for small N; 256-row blocks for large N so
    the grid can pipeline and shard across v7x's two TensorCores while the
    per-block working set stays a few MiB (safe for v7x's 32 MiB scoped VMEM)."""
    if N <= 256:
        return N
    for bn in (256, 128, 64, 32, 16, 8):
        if N % bn == 0:
            return bn
    return N  # fallback: single block (correct, just unsharded)


@functools.partial(jax.jit, static_argnames=("layer_dims", "kernel_size"))
def convmodel_forward(x, w_flat, b_flat, *, layer_dims, kernel_size):
    """x: (N, 1, L) f32. Returns (N, 1, L) f32. No wrapper-side array ops:
    the channel-dim squeeze/expand is folded into the BlockSpecs."""
    N, one, L = x.shape
    assert one == 1, "Conv1d input must have a single channel"
    block_n = _choose_block_n(N)
    kernel = _make_fused_kernel(layer_dims, kernel_size)

    io_spec = pl.BlockSpec((block_n, pl.Squeezed(), L), lambda i: (i, 0, 0))
    return pl.pallas_call(
        kernel,
        out_shape=jax.ShapeDtypeStruct((N, 1, L), x.dtype),
        grid=(N // block_n,),                  # tile over N only (never over L!)
        in_specs=[
            io_spec,                                               # x (squeezed to (bn, L))
            pl.BlockSpec(memory_space=pltpu.MemorySpace.SMEM),     # flat weights
            pl.BlockSpec(memory_space=pltpu.MemorySpace.SMEM),     # flat biases
        ],
        out_specs=io_spec,
        compiler_params=pltpu.CompilerParams(
            dimension_semantics=("parallel",),  # shards rows across v7x's 2 TCs
        ),
    )(x, w_flat, b_flat)


# ----------------------------------------------------------------------------
# Parameter init (PyTorch Conv1d default) + one-time packing
# ----------------------------------------------------------------------------
def init_params(key, kernel_size, depth, channels):
    params = []
    for kk in range(depth):
        in_ch = 1 if kk == 0 else channels
        out_ch = 1 if kk == depth - 1 else channels
        key, kw, kb = jax.random.split(key, 3)
        bound = 1.0 / jnp.sqrt(in_ch * kernel_size)
        w = jax.random.uniform(
            kw, (out_ch, in_ch, kernel_size), jnp.float32, -bound, bound
        )
        b = jax.random.uniform(kb, (out_ch,), jnp.float32, -bound, bound)
        params.append((w, b))
    return params


def pack_params(params):
    """Flatten all layer weights/biases once into SMEM-friendly 1-D f32 arrays."""
    layer_dims = tuple((w.shape[1], w.shape[0]) for (w, _) in params)  # (cin, cout)
    w_flat = jnp.concatenate([w.reshape(-1) for (w, _) in params])
    b_flat = jnp.concatenate([b.reshape(-1) for (_, b) in params])
    return w_flat, b_flat, layer_dims


# ----------------------------------------------------------------------------
# Pure-JAX reference (for correctness check)
# ----------------------------------------------------------------------------
def conv1d_circular_ref(x, w, b, apply_act):
    K = w.shape[-1]
    pad = (K - 1) // 2
    acc = jnp.zeros((x.shape[0], w.shape[0], x.shape[2]), jnp.float32)
    for t in range(K):
        acc = acc + jnp.einsum(
            "oc,ncl->nol", w[:, :, t], jnp.roll(x, pad - t, axis=-1)
        )
    acc = acc + b[None, :, None]
    return jnp.tanh(acc) if apply_act else acc


def forward_ref(x, params):
    out = x
    depth = len(params)
    for kk, (w, b) in enumerate(params):
        out = conv1d_circular_ref(out, w, b, kk != depth - 1)
    return out


# TODO(synk): `set_symmetry()` is a training-time weight transform, not part of
# the forward pass; it is not implemented here.

if __name__ == "__main__":
    kernel_size = 3
    depth = 3
    channels = 4
    N, L = 8, 128       # batch multiple of 8 fills all sublanes of each vreg

    key = jax.random.PRNGKey(0)
    key, kx = jax.random.split(key)
    x = jax.random.normal(kx, (N, 1, L), jnp.float32)   # Conv1d input: (N, 1, L)

    params = init_params(key, kernel_size, depth, channels)
    w_flat, b_flat, layer_dims = pack_params(params)

    y = convmodel_forward(
        x, w_flat, b_flat, layer_dims=layer_dims, kernel_size=kernel_size
    )
    y = jax.block_until_ready(y)

    y_ref = forward_ref(x, params)
    assert y.shape == (N, 1, L)
    assert jnp.allclose(y, y_ref, atol=1e-5, rtol=1e-5), "mismatch vs reference"

    print("KERNEL_OK")
</pallas_src>

<mosaic_0001>
module attributes {stable_mosaic.version = 11 : i64} {
  func.func @kernel(%arg0: i32, %arg1: memref<8x1x128xf32, #tpu.memory_space<vmem>>, %arg2: memref<72xf32, #tpu.memory_space<smem>>, %arg3: memref<9xf32, #tpu.memory_space<smem>>, %arg4: memref<8x1x128xf32, #tpu.memory_space<vmem>>) attributes {dimension_semantics = [#tpu.dimension_semantics<parallel>], iteration_bounds = array<i64: 1>, scalar_prefetch = 0 : i64, scratch_operands = 0 : i64, tpu.core_type = #tpu.core_type<tc>, window_params = [{transform_indices = @transform_0, window_bounds = array<i64: 8, 1, 128>}, {transform_indices = @transform_1, window_bounds = array<i64: 72>}, {transform_indices = @transform_2, window_bounds = array<i64: 9>}, {transform_indices = @transform_3, window_bounds = array<i64: 8, 1, 128>}]} {
    %c0 = arith.constant 0 : index
    %c0_0 = arith.constant 0 : index
    %c0_1 = arith.constant 0 : index
    %0 = vector.load %arg1[%c0, %c0_0, %c0_1] : memref<8x1x128xf32, #tpu.memory_space<vmem>>, vector<8x1x128xf32>
    %1 = vector.shape_cast %0 : vector<8x1x128xf32> to vector<8x128xf32>
    %c1_i32 = arith.constant 1 : i32
    %2 = tpu.dynamic_rotate %1 by %c1_i32 dim 1 : vector<8x128xf32>, i32 -> vector<8x128xf32>
    %c127_i32 = arith.constant 127 : i32
    %3 = tpu.dynamic_rotate %1 by %c127_i32 dim 1 : vector<8x128xf32>, i32 -> vector<8x128xf32>
    %c0_2 = arith.constant 0 : index
    %4 = memref.load %arg2[%c0_2] : memref<72xf32, #tpu.memory_space<smem>>
    %5 = vector.broadcast %4 : f32 to vector<8x128xf32>
    %6 = arith.mulf %2, %5 : vector<8x128xf32>
    %c1 = arith.constant 1 : index
    %7 = memref.load %arg2[%c1] : memref<72xf32, #tpu.memory_space<smem>>
    %8 = vector.broadcast %7 : f32 to vector<8x128xf32>
    %9 = arith.mulf %1, %8 : vector<8x128xf32>
    %10 = arith.addf %6, %9 : vector<8x128xf32>
    %c2 = arith.constant 2 : index
    %11 = memref.load %arg2[%c2] : memref<72xf32, #tpu.memory_space<smem>>
    %12 = vector.broadcast %11 : f32 to vector<8x128xf32>
    %13 = arith.mulf %3, %12 : vector<8x128xf32>
    %14 = arith.addf %10, %13 : vector<8x128xf32>
    %c0_3 = arith.constant 0 : index
    %15 = memref.load %arg3[%c0_3] : memref<9xf32, #tpu.memory_space<smem>>
    %16 = vector.broadcast %15 : f32 to vector<8x128xf32>
    %17 = arith.addf %14, %16 : vector<8x128xf32>
    %18 = math.tanh %17 : vector<8x128xf32>
    %c3 = arith.constant 3 : index
    %19 = memref.load %arg2[%c3] : memref<72xf32, #tpu.memory_space<smem>>
    %20 = vector.broadcast %19 : f32 to vector<8x128xf32>
    %21 = arith.mulf %2, %20 : vector<8x128xf32>
    %c4 = arith.constant 4 : index
    %22 = memref.load %arg2[%c4] : memref<72xf32, #tpu.memory_space<smem>>
    %23 = vector.broadcast %22 : f32 to vector<8x128xf32>
    %24 = arith.mulf %1, %23 : vector<8x128xf32>
    %25 = arith.addf %21, %24 : vector<8x128xf32>
    %c5 = arith.constant 5 : index
    %26 = memref.load %arg2[%c5] : memref<72xf32, #tpu.memory_space<smem>>
    %27 = vector.broadcast %26 : f32 to vector<8x128xf32>
    %28 = arith.mulf %3, %27 : vector<8x128xf32>
    %29 = arith.addf %25, %28 : vector<8x128xf32>
    %c1_4 = arith.constant 1 : index
    %30 = memref.load %arg3[%c1_4] : memref<9xf32, #tpu.memory_space<smem>>
    %31 = vector.broadcast %30 : f32 to vector<8x128xf32>
    %32 = arith.addf %29, %31 : vector<8x128xf32>
    %33 = math.tanh %32 : vector<8x128xf32>
    %c6 = arith.constant 6 : index
    %34 = memref.load %arg2[%c6] : memref<72xf32, #tpu.memory_space<smem>>
    %35 = vector.broadcast %34 : f32 to vector<8x128xf32>
    %36 = arith.mulf %2, %35 : vector<8x128xf32>
    %c7 = arith.constant 7 : index
    %37 = memref.load %arg2[%c7] : memref<72xf32, #tpu.memory_space<smem>>
    %38 = vector.broadcast %37 : f32 to vector<8x128xf32>
    %39 = arith.mulf %1, %38 : vector<8x128xf32>
    %40 = arith.addf %36, %39 : vector<8x128xf32>
    %c8 = arith.constant 8 : index
    %41 = memref.load %arg2[%c8] : memref<72xf32, #tpu.memory_space<smem>>
    %42 = vector.broadcast %41 : f32 to vector<8x128xf32>
    %43 = arith.mulf %3, %42 : vector<8x128xf32>
    %44 = arith.addf %40, %43 : vector<8x128xf32>
    %c2_5 = arith.constant 2 : index
    %45 = memref.load %arg3[%c2_5] : memref<9xf32, #tpu.memory_space<smem>>
    %46 = vector.broadcast %45 : f32 to vector<8x128xf32>
    %47 = arith.addf %44, %46 : vector<8x128xf32>
    %48 = math.tanh %47 : vector<8x128xf32>
    %c9 = arith.constant 9 : index
    %49 = memref.load %arg2[%c9] : memref<72xf32, #tpu.memory_space<smem>>
    %50 = vector.broadcast %49 : f32 to vector<8x128xf32>
    %51 = arith.mulf %2, %50 : vector<8x128xf32>
    %c10 = arith.constant 10 : index
    %52 = memref.load %arg2[%c10] : memref<72xf32, #tpu.memory_space<smem>>
    %53 = vector.broadcast %52 : f32 to vector<8x128xf32>
    %54 = arith.mulf %1, %53 : vector<8x128xf32>
    %55 = arith.addf %51, %54 : vector<8x128xf32>
    %c11 = arith.constant 11 : index
    %56 = memref.load %arg2[%c11] : memref<72xf32, #tpu.memory_space<smem>>
    %57 = vector.broadcast %56 : f32 to vector<8x128xf32>
    %58 = arith.mulf %3, %57 : vector<8x128xf32>
    %59 = arith.addf %55, %58 : vector<8x128xf32>
    %c3_6 = arith.constant 3 : index
    %60 = memref.load %arg3[%c3_6] : memref<9xf32, #tpu.memory_space<smem>>
    %61 = vector.broadcast %60 : f32 to vector<8x128xf32>
    %62 = arith.addf %59, %61 : vector<8x128xf32>
    %63 = math.tanh %62 : vector<8x128xf32>
    %c1_i32_7 = arith.constant 1 : i32
    %64 = tpu.dynamic_rotate %18 by %c1_i32_7 dim 1 : vector<8x128xf32>, i32 -> vector<8x128xf32>
    %c127_i32_8 = arith.constant 127 : i32
    %65 = tpu.dynamic_rotate %18 by %c127_i32_8 dim 1 : vector<8x128xf32>, i32 -> vector<8x128xf32>
    %c1_i32_9 = arith.constant 1 : i32
    %66 = tpu.dynamic_rotate %33 by %c1_i32_9 dim 1 : vector<8x128xf32>, i32 -> vector<8x128xf32>
    %c127_i32_10 = arith.constant 127 : i32
    %67 = tpu.dynamic_rotate %33 by %c127_i32_10 dim 1 : vector<8x128xf32>, i32 -> vector<8x128xf32>
    %c1_i32_11 = arith.constant 1 : i32
    %68 = tpu.dynamic_rotate %48 by %c1_i32_11 dim 1 : vector<8x128xf32>, i32 -> vector<8x128xf32>
    %c127_i32_12 = arith.constant 127 : i32
    %69 = tpu.dynamic_rotate %48 by %c127_i32_12 dim 1 : vector<8x128xf32>, i32 -> vector<8x128xf32>
    %c1_i32_13 = arith.constant 1 : i32
    %70 = tpu.dynamic_rotate %63 by %c1_i32_13 dim 1 : vector<8x128xf32>, i32 -> vector<8x128xf32>
    %c127_i32_14 = arith.constant 127 : i32
    %71 = tpu.dynamic_rotate %63 by %c127_i32_14 dim 1 : vector<8x128xf32>, i32 -> vector<8x128xf32>
    %c12 = arith.constant 12 : index
    %72 = memref.load %arg2[%c12] : memref<72xf32, #tpu.memory_space<smem>>
    %73 = vector.broadcast %72 : f32 to vector<8x128xf32>
    %74 = arith.mulf %64, %73 : vector<8x128xf32>
    %c13 = arith.constant 13 : index
    %75 = memref.load %arg2[%c13] : memref<72xf32, #tpu.memory_space<smem>>
    %76 = vector.broadcast %75 : f32 to vector<8x128xf32>
    %77 = arith.mulf %18, %76 : vector<8x128xf32>
    %78 = arith.addf %74, %77 : vector<8x128xf32>
    %c14 = arith.constant 14 : index
    %79 = memref.load %arg2[%c14] : memref<72xf32, #tpu.memory_space<smem>>
    %80 = vector.broadcast %79 : f32 to vector<8x128xf32>
    %81 = arith.mulf %65, %80 : vector<8x128xf32>
    %82 = arith.addf %78, %81 : vector<8x128xf32>
    %c15 = arith.constant 15 : index
    %83 = memref.load %arg2[%c15] : memref<72xf32, #tpu.memory_space<smem>>
    %84 = vector.broadcast %83 : f32 to vector<8x128xf32>
    %85 = arith.mulf %66, %84 : vector<8x128xf32>
    %86 = arith.addf %82, %85 : vector<8x128xf32>
    %c16 = arith.constant 16 : index
    %87 = memref.load %arg2[%c16] : memref<72xf32, #tpu.memory_space<smem>>
    %88 = vector.broadcast %87 : f32 to vector<8x128xf32>
    %89 = arith.mulf %33, %88 : vector<8x128xf32>
    %90 = arith.addf %86, %89 : vector<8x128xf32>
    %c17 = arith.constant 17 : index
    %91 = memref.load %arg2[%c17] : memref<72xf32, #tpu.memory_space<smem>>
    %92 = vector.broadcast %91 : f32 to vector<8x128xf32>
    %93 = arith.mulf %67, %92 : vector<8x128xf32>
    %94 = arith.addf %90, %93 : vector<8x128xf32>
    %c18 = arith.constant 18 : index
    %95 = memref.load %arg2[%c18] : memref<72xf32, #tpu.memory_space<smem>>
    %96 = vector.broadcast %95 : f32 to vector<8x128xf32>
    %97 = arith.mulf %68, %96 : vector<8x128xf32>
    %98 = arith.addf %94, %97 : vector<8x128xf32>
    %c19 = arith.constant 19 : index
    %99 = memref.load %arg2[%c19] : memref<72xf32, #tpu.memory_space<smem>>
    %100 = vector.broadcast %99 : f32 to vector<8x128xf32>
    %101 = arith.mulf %48, %100 : vector<8x128xf32>
    %102 = arith.addf %98, %101 : vector<8x128xf32>
    %c20 = arith.constant 20 : index
    %103 = memref.load %arg2[%c20] : memref<72xf32, #tpu.memory_space<smem>>
    %104 = vector.broadcast %103 : f32 to vector<8x128xf32>
    %105 = arith.mulf %69, %104 : vector<8x128xf32>
    %106 = arith.addf %102, %105 : vector<8x128xf32>
    %c21 = arith.constant 21 : index
    %107 = memref.load %arg2[%c21] : memref<72xf32, #tpu.memory_space<smem>>
    %108 = vector.broadcast %107 : f32 to vector<8x128xf32>
    %109 = arith.mulf %70, %108 : vector<8x128xf32>
    %110 = arith.addf %106, %109 : vector<8x128xf32>
    %c22 = arith.constant 22 : index
    %111 = memref.load %arg2[%c22] : memref<72xf32, #tpu.memory_space<smem>>
    %112 = vector.broadcast %111 : f32 to vector<8x128xf32>
    %113 = arith.mulf %63, %112 : vector<8x128xf32>
    %114 = arith.addf %110, %113 : vector<8x128xf32>
    %c23 = arith.constant 23 : index
    %115 = memref.load %arg2[%c23] : memref<72xf32, #tpu.memory_space<smem>>
    %116 = vector.broadcast %115 : f32 to vector<8x128xf32>
    %117 = arith.mulf %71, %116 : vector<8x128xf32>
    %118 = arith.addf %114, %117 : vector<8x128xf32>
    %c4_15 = arith.constant 4 : index
    %119 = memref.load %arg3[%c4_15] : memref<9xf32, #tpu.memory_space<smem>>
    %120 = vector.broadcast %119 : f32 to vector<8x128xf32>
    %121 = arith.addf %118, %120 : vector<8x128xf32>
    %122 = math.tanh %121 : vector<8x128xf32>
    %c24 = arith.constant 24 : index
    %123 = memref.load %arg2[%c24] : memref<72xf32, #tpu.memory_space<smem>>
    %124 = vector.broadcast %123 : f32 to vector<8x128xf32>
    %125 = arith.mulf %64, %124 : vector<8x128xf32>
    %c25 = arith.constant 25 : index
    %126 = memref.load %arg2[%c25] : memref<72xf32, #tpu.memory_space<smem>>
    %127 = vector.broadcast %126 : f32 to vector<8x128xf32>
    %128 = arith.mulf %18, %127 : vector<8x128xf32>
    %129 = arith.addf %125, %128 : vector<8x128xf32>
    %c26 = arith.constant 26 : index
    %130 = memref.load %arg2[%c26] : memref<72xf32, #tpu.memory_space<smem>>
    %131 = vector.broadcast %130 : f32 to vector<8x128xf32>
    %132 = arith.mulf %65, %131 : vector<8x128xf32>
    %133 = arith.addf %129, %132 : vector<8x128xf32>
    %c27 = arith.constant 27 : index
    %134 = memref.load %arg2[%c27] : memref<72xf32, #tpu.memory_space<smem>>
    %135 = vector.broadcast %134 : f32 to vector<8x128xf32>
    %136 = arith.mulf %66, %135 : vector<8x128xf32>
    %137 = arith.addf %133, %136 : vector<8x128xf32>
    %c28 = arith.constant 28 : index
    %138 = memref.load %arg2[%c28] : memref<72xf32, #tpu.memory_space<smem>>
    %139 = vector.broadcast %138 : f32 to vector<8x128xf32>
    %140 = arith.mulf %33, %139 : vector<8x128xf32>
    %141 = arith.addf %137, %140 : vector<8x128xf32>
    %c29 = arith.constant 29 : index
    %142 = memref.load %arg2[%c29] : memref<72xf32, #tpu.memory_space<smem>>
    %143 = vector.broadcast %142 : f32 to vector<8x128xf32>
    %144 = arith.mulf %67, %143 : vector<8x128xf32>
    %145 = arith.addf %141, %144 : vector<8x128xf32>
    %c30 = arith.constant 30 : index
    %146 = memref.load %arg2[%c30] : memref<72xf32, #tpu.memory_space<smem>>
    %147 = vector.broadcast %146 : f32 to vector<8x128xf32>
    %148 = arith.mulf %68, %147 : vector<8x128xf32>
    %149 = arith.addf %145, %148 : vector<8x128xf32>
    %c31 = arith.constant 31 : index
    %150 = memref.load %arg2[%c31] : memref<72xf32, #tpu.memory_space<smem>>
    %151 = vector.broadcast %150 : f32 to vector<8x128xf32>
    %152 = arith.mulf %48, %151 : vector<8x128xf32>
    %153 = arith.addf %149, %152 : vector<8x128xf32>
    %c32 = arith.constant 32 : index
    %154 = memref.load %arg2[%c32] : memref<72xf32, #tpu.memory_space<smem>>
    %155 = vector.broadcast %154 : f32 to vector<8x128xf32>
    %156 = arith.mulf %69, %155 : vector<8x128xf32>
    %157 = arith.addf %153, %156 : vector<8x128xf32>
    %c33 = arith.constant 33 : index
    %158 = memref.load %arg2[%c33] : memref<72xf32, #tpu.memory_space<smem>>
    %159 = vector.broadcast %158 : f32 to vector<8x128xf32>
    %160 = arith.mulf %70, %159 : vector<8x128xf32>
    %161 = arith.addf %157, %160 : vector<8x128xf32>
    %c34 = arith.constant 34 : index
    %162 = memref.load %arg2[%c34] : memref<72xf32, #tpu.memory_space<smem>>
    %163 = vector.broadcast %162 : f32 to vector<8x128xf32>
    %164 = arith.mulf %63, %163 : vector<8x128xf32>
    %165 = arith.addf %161, %164 : vector<8x128xf32>
    %c35 = arith.constant 35 : index
    %166 = memref.load %arg2[%c35] : memref<72xf32, #tpu.memory_space<smem>>
    %167 = vector.broadcast %166 : f32 to vector<8x128xf32>
    %168 = arith.mulf %71, %167 : vector<8x128xf32>
    %169 = arith.addf %165, %168 : vector<8x128xf32>
    %c5_16 = arith.constant 5 : index
    %170 = memref.load %arg3[%c5_16] : memref<9xf32, #tpu.memory_space<smem>>
    %171 = vector.broadcast %170 : f32 to vector<8x128xf32>
    %172 = arith.addf %169, %171 : vector<8x128xf32>
    %173 = math.tanh %172 : vector<8x128xf32>
    %c36 = arith.constant 36 : index
    %174 = memref.load %arg2[%c36] : memref<72xf32, #tpu.memory_space<smem>>
    %175 = vector.broadcast %174 : f32 to vector<8x128xf32>
    %176 = arith.mulf %64, %175 : vector<8x128xf32>
    %c37 = arith.constant 37 : index
    %177 = memref.load %arg2[%c37] : memref<72xf32, #tpu.memory_space<smem>>
    %178 = vector.broadcast %177 : f32 to vector<8x128xf32>
    %179 = arith.mulf %18, %178 : vector<8x128xf32>
    %180 = arith.addf %176, %179 : vector<8x128xf32>
    %c38 = arith.constant 38 : index
    %181 = memref.load %arg2[%c38] : memref<72xf32, #tpu.memory_space<smem>>
    %182 = vector.broadcast %181 : f32 to vector<8x128xf32>
    %183 = arith.mulf %65, %182 : vector<8x128xf32>
    %184 = arith.addf %180, %183 : vector<8x128xf32>
    %c39 = arith.constant 39 : index
    %185 = memref.load %arg2[%c39] : memref<72xf32, #tpu.memory_space<smem>>
    %186 = vector.broadcast %185 : f32 to vector<8x128xf32>
    %187 = arith.mulf %66, %186 : vector<8x128xf32>
    %188 = arith.addf %184, %187 : vector<8x128xf32>
    %c40 = arith.constant 40 : index
    %189 = memref.load %arg2[%c40] : memref<72xf32, #tpu.memory_space<smem>>
    %190 = vector.broadcast %189 : f32 to vector<8x128xf32>
    %191 = arith.mulf %33, %190 : vector<8x128xf32>
    %192 = arith.addf %188, %191 : vector<8x128xf32>
    %c41 = arith.constant 41 : index
    %193 = memref.load %arg2[%c41] : memref<72xf32, #tpu.memory_space<smem>>
    %194 = vector.broadcast %193 : f32 to vector<8x128xf32>
    %195 = arith.mulf %67, %194 : vector<8x128xf32>
    %196 = arith.addf %192, %195 : vector<8x128xf32>
    %c42 = arith.constant 42 : index
    %197 = memref.load %arg2[%c42] : memref<72xf32, #tpu.memory_space<smem>>
    %198 = vector.broadcast %197 : f32 to vector<8x128xf32>
    %199 = arith.mulf %68, %198 : vector<8x128xf32>
    %200 = arith.addf %196, %199 : vector<8x128xf32>
    %c43 = arith.constant 43 : index
    %201 = memref.load %arg2[%c43] : memref<72xf32, #tpu.memory_space<smem>>
    %202 = vector.broadcast %201 : f32 to vector<8x128xf32>
    %203 = arith.mulf %48, %202 : vector<8x128xf32>
    %204 = arith.addf %200, %203 : vector<8x128xf32>
    %c44 = arith.constant 44 : index
    %205 = memref.load %arg2[%c44] : memref<72xf32, #tpu.memory_space<smem>>
    %206 = vector.broadcast %205 : f32 to vector<8x128xf32>
    %207 = arith.mulf %69, %206 : vector<8x128xf32>
    %208 = arith.addf %204, %207 : vector<8x128xf32>
    %c45 = arith.constant 45 : index
    %209 = memref.load %arg2[%c45] : memref<72xf32, #tpu.memory_space<smem>>
    %210 = vector.broadcast %209 : f32 to vector<8x128xf32>
    %211 = arith.mulf %70, %210 : vector<8x128xf32>
    %212 = arith.addf %208, %211 : vector<8x128xf32>
    %c46 = arith.constant 46 : index
    %213 = memref.load %arg2[%c46] : memref<72xf32, #tpu.memory_space<smem>>
    %214 = vector.broadcast %213 : f32 to vector<8x128xf32>
    %215 = arith.mulf %63, %214 : vector<8x128xf32>
    %216 = arith.addf %212, %215 : vector<8x128xf32>
    %c47 = arith.constant 47 : index
    %217 = memref.load %arg2[%c47] : memref<72xf32, #tpu.memory_space<smem>>
    %218 = vector.broadcast %217 : f32 to vector<8x128xf32>
    %219 = arith.mulf %71, %218 : vector<8x128xf32>
    %220 = arith.addf %216, %219 : vector<8x128xf32>
    %c6_17 = arith.constant 6 : index
    %221 = memref.load %arg3[%c6_17] : memref<9xf32, #tpu.memory_space<smem>>
    %222 = vector.broadcast %221 : f32 to vector<8x128xf32>
    %223 = arith.addf %220, %222 : vector<8x128xf32>
    %224 = math.tanh %223 : vector<8x128xf32>
    %c48 = arith.constant 48 : index
    %225 = memref.load %arg2[%c48] : memref<72xf32, #tpu.memory_space<smem>>
    %226 = vector.broadcast %225 : f32 to vector<8x128xf32>
    %227 = arith.mulf %64, %226 : vector<8x128xf32>
    %c49 = arith.constant 49 : index
    %228 = memref.load %arg2[%c49] : memref<72xf32, #tpu.memory_space<smem>>
    %229 = vector.broadcast %228 : f32 to vector<8x128xf32>
    %230 = arith.mulf %18, %229 : vector<8x128xf32>
    %231 = arith.addf %227, %230 : vector<8x128xf32>
    %c50 = arith.constant 50 : index
    %232 = memref.load %arg2[%c50] : memref<72xf32, #tpu.memory_space<smem>>
    %233 = vector.broadcast %232 : f32 to vector<8x128xf32>
    %234 = arith.mulf %65, %233 : vector<8x128xf32>
    %235 = arith.addf %231, %234 : vector<8x128xf32>
    %c51 = arith.constant 51 : index
    %236 = memref.load %arg2[%c51] : memref<72xf32, #tpu.memory_space<smem>>
    %237 = vector.broadcast %236 : f32 to vector<8x128xf32>
    %238 = arith.mulf %66, %237 : vector<8x128xf32>
    %239 = arith.addf %235, %238 : vector<8x128xf32>
    %c52 = arith.constant 52 : index
    %240 = memref.load %arg2[%c52] : memref<72xf32, #tpu.memory_space<smem>>
    %241 = vector.broadcast %240 : f32 to vector<8x128xf32>
    %242 = arith.mulf %33, %241 : vector<8x128xf32>
    %243 = arith.addf %239, %242 : vector<8x128xf32>
    %c53 = arith.constant 53 : index
    %244 = memref.load %arg2[%c53] : memref<72xf32, #tpu.memory_space<smem>>
    %245 = vector.broadcast %244 : f32 to vector<8x128xf32>
    %246 = arith.mulf %67, %245 : vector<8x128xf32>
    %247 = arith.addf %243, %246 : vector<8x128xf32>
    %c54 = arith.constant 54 : index
    %248 = memref.load %arg2[%c54] : memref<72xf32, #tpu.memory_space<smem>>
    %249 = vector.broadcast %248 : f32 to vector<8x128xf32>
    %250 = arith.mulf %68, %249 : vector<8x128xf32>
    %251 = arith.addf %247, %250 : vector<8x128xf32>
    %c55 = arith.constant 55 : index
    %252 = memref.load %arg2[%c55] : memref<72xf32, #tpu.memory_space<smem>>
    %253 = vector.broadcast %252 : f32 to vector<8x128xf32>
    %254 = arith.mulf %48, %253 : vector<8x128xf32>
    %255 = arith.addf %251, %254 : vector<8x128xf32>
    %c56 = arith.constant 56 : index
    %256 = memref.load %arg2[%c56] : memref<72xf32, #tpu.memory_space<smem>>
    %257 = vector.broadcast %256 : f32 to vector<8x128xf32>
    %258 = arith.mulf %69, %257 : vector<8x128xf32>
    %259 = arith.addf %255, %258 : vector<8x128xf32>
    %c57 = arith.constant 57 : index
    %260 = memref.load %arg2[%c57] : memref<72xf32, #tpu.memory_space<smem>>
    %261 = vector.broadcast %260 : f32 to vector<8x128xf32>
    %262 = arith.mulf %70, %261 : vector<8x128xf32>
    %263 = arith.addf %259, %262 : vector<8x128xf32>
    %c58 = arith.constant 58 : index
    %264 = memref.load %arg2[%c58] : memref<72xf32, #tpu.memory_space<smem>>
    %265 = vector.broadcast %264 : f32 to vector<8x128xf32>
    %266 = arith.mulf %63, %265 : vector<8x128xf32>
    %267 = arith.addf %263, %266 : vector<8x128xf32>
    %c59 = arith.constant 59 : index
    %268 = memref.load %arg2[%c59] : memref<72xf32, #tpu.memory_space<smem>>
    %269 = vector.broadcast %268 : f32 to vector<8x128xf32>
    %270 = arith.mulf %71, %269 : vector<8x128xf32>
    %271 = arith.addf %267, %270 : vector<8x128xf32>
    %c7_18 = arith.constant 7 : index
    %272 = memref.load %arg3[%c7_18] : memref<9xf32, #tpu.memory_space<smem>>
    %273 = vector.broadcast %272 : f32 to vector<8x128xf32>
    %274 = arith.addf %271, %273 : vector<8x128xf32>
    %275 = math.tanh %274 : vector<8x128xf32>
    %c1_i32_19 = arith.constant 1 : i32
    %276 = tpu.dynamic_rotate %122 by %c1_i32_19 dim 1 : vector<8x128xf32>, i32 -> vector<8x128xf32>
    %c127_i32_20 = arith.constant 127 : i32
    %277 = tpu.dynamic_rotate %122 by %c127_i32_20 dim 1 : vector<8x128xf32>, i32 -> vector<8x128xf32>
    %c1_i32_21 = arith.constant 1 : i32
    %278 = tpu.dynamic_rotate %173 by %c1_i32_21 dim 1 : vector<8x128xf32>, i32 -> vector<8x128xf32>
    %c127_i32_22 = arith.constant 127 : i32
    %279 = tpu.dynamic_rotate %173 by %c127_i32_22 dim 1 : vector<8x128xf32>, i32 -> vector<8x128xf32>
    %c1_i32_23 = arith.constant 1 : i32
    %280 = tpu.dynamic_rotate %224 by %c1_i32_23 dim 1 : vector<8x128xf32>, i32 -> vector<8x128xf32>
    %c127_i32_24 = arith.constant 127 : i32
    %281 = tpu.dynamic_rotate %224 by %c127_i32_24 dim 1 : vector<8x128xf32>, i32 -> vector<8x128xf32>
    %c1_i32_25 = arith.constant 1 : i32
    %282 = tpu.dynamic_rotate %275 by %c1_i32_25 dim 1 : vector<8x128xf32>, i32 -> vector<8x128xf32>
    %c127_i32_26 = arith.constant 127 : i32
    %283 = tpu.dynamic_rotate %275 by %c127_i32_26 dim 1 : vector<8x128xf32>, i32 -> vector<8x128xf32>
    %c60 = arith.constant 60 : index
    %284 = memref.load %arg2[%c60] : memref<72xf32, #tpu.memory_space<smem>>
    %285 = vector.broadcast %284 : f32 to vector<8x128xf32>
    %286 = arith.mulf %276, %285 : vector<8x128xf32>
    %c61 = arith.constant 61 : index
    %287 = memref.load %arg2[%c61] : memref<72xf32, #tpu.memory_space<smem>>
    %288 = vector.broadcast %287 : f32 to vector<8x128xf32>
    %289 = arith.mulf %122, %288 : vector<8x128xf32>
    %290 = arith.addf %286, %289 : vector<8x128xf32>
    %c62 = arith.constant 62 : index
    %291 = memref.load %arg2[%c62] : memref<72xf32, #tpu.memory_space<smem>>
    %292 = vector.broadcast %291 : f32 to vector<8x128xf32>
    %293 = arith.mulf %277, %292 : vector<8x128xf32>
    %294 = arith.addf %290, %293 : vector<8x128xf32>
    %c63 = arith.constant 63 : index
    %295 = memref.load %arg2[%c63] : memref<72xf32, #tpu.memory_space<smem>>
    %296 = vector.broadcast %295 : f32 to vector<8x128xf32>
    %297 = arith.mulf %278, %296 : vector<8x128xf32>
    %298 = arith.addf %294, %297 : vector<8x128xf32>
    %c64 = arith.constant 64 : index
    %299 = memref.load %arg2[%c64] : memref<72xf32, #tpu.memory_space<smem>>
    %300 = vector.broadcast %299 : f32 to vector<8x128xf32>
    %301 = arith.mulf %173, %300 : vector<8x128xf32>
    %302 = arith.addf %298, %301 : vector<8x128xf32>
    %c65 = arith.constant 65 : index
    %303 = memref.load %arg2[%c65] : memref<72xf32, #tpu.memory_space<smem>>
    %304 = vector.broadcast %303 : f32 to vector<8x128xf32>
    %305 = arith.mulf %279, %304 : vector<8x128xf32>
    %306 = arith.addf %302, %305 : vector<8x128xf32>
    %c66 = arith.constant 66 : index
    %307 = memref.load %arg2[%c66] : memref<72xf32, #tpu.memory_space<smem>>
    %308 = vector.broadcast %307 : f32 to vector<8x128xf32>
    %309 = arith.mulf %280, %308 : vector<8x128xf32>
    %310 = arith.addf %306, %309 : vector<8x128xf32>
    %c67 = arith.constant 67 : index
    %311 = memref.load %arg2[%c67] : memref<72xf32, #tpu.memory_space<smem>>
    %312 = vector.broadcast %311 : f32 to vector<8x128xf32>
    %313 = arith.mulf %224, %312 : vector<8x128xf32>
    %314 = arith.addf %310, %313 : vector<8x128xf32>
    %c68 = arith.constant 68 : index
    %315 = memref.load %arg2[%c68] : memref<72xf32, #tpu.memory_space<smem>>
    %316 = vector.broadcast %315 : f32 to vector<8x128xf32>
    %317 = arith.mulf %281, %316 : vector<8x128xf32>
    %318 = arith.addf %314, %317 : vector<8x128xf32>
    %c69 = arith.constant 69 : index
    %319 = memref.load %arg2[%c69] : memref<72xf32, #tpu.memory_space<smem>>
    %320 = vector.broadcast %319 : f32 to vector<8x128xf32>
    %321 = arith.mulf %282, %320 : vector<8x128xf32>
    %322 = arith.addf %318, %321 : vector<8x128xf32>
    %c70 = arith.constant 70 : index
    %323 = memref.load %arg2[%c70] : memref<72xf32, #tpu.memory_space<smem>>
    %324 = vector.broadcast %323 : f32 to vector<8x128xf32>
    %325 = arith.mulf %275, %324 : vector<8x128xf32>
    %326 = arith.addf %322, %325 : vector<8x128xf32>
    %c71 = arith.constant 71 : index
    %327 = memref.load %arg2[%c71] : memref<72xf32, #tpu.memory_space<smem>>
    %328 = vector.broadcast %327 : f32 to vector<8x128xf32>
    %329 = arith.mulf %283, %328 : vector<8x128xf32>
    %330 = arith.addf %326, %329 : vector<8x128xf32>
    %c8_27 = arith.constant 8 : index
    %331 = memref.load %arg3[%c8_27] : memref<9xf32, #tpu.memory_space<smem>>
    %332 = vector.broadcast %331 : f32 to vector<8x128xf32>
    %333 = arith.addf %330, %332 : vector<8x128xf32>
    %c0_28 = arith.constant 0 : index
    %c0_29 = arith.constant 0 : index
    %c0_30 = arith.constant 0 : index
    %334 = vector.load %arg4[%c0_28, %c0_29, %c0_30] : memref<8x1x128xf32, #tpu.memory_space<vmem>>, vector<8x1x128xf32>
    %335 = vector.shape_cast %334 : vector<8x1x128xf32> to vector<8x128xf32>
    %336 = vector.shape_cast %333 : vector<8x128xf32> to vector<8x1x128xf32>
    tpu.vector_store %arg4[%c0_28, %c0_29, %c0_30], %336 {strides = array<i32>} : memref<8x1x128xf32, #tpu.memory_space<vmem>>, vector<8x1x128xf32>,
    return
  }
  func.func @transform_0(%arg0: i32) -> (i32, i32, i32) {
    %c0_i32 = arith.constant 0 : i32
    %c0_i32_0 = arith.constant 0 : i32
    %c0_i32_1 = arith.constant 0 : i32
    return %arg0, %c0_i32, %c0_i32_0 : i32, i32, i32
  }
  func.func @transform_1(%arg0: i32) -> i32 {
    %c0_i32 = arith.constant 0 : i32
    %c0_i32_0 = arith.constant 0 : i32
    return %c0_i32 : i32
  }
  func.func @transform_2(%arg0: i32) -> i32 {
    %c0_i32 = arith.constant 0 : i32
    %c0_i32_0 = arith.constant 0 : i32
    return %c0_i32 : i32
  }
  func.func @transform_3(%arg0: i32) -> (i32, i32, i32) {
    %c0_i32 = arith.constant 0 : i32
    %c0_i32_0 = arith.constant 0 : i32
    %c0_i32_1 = arith.constant 0 : i32
    return %arg0, %c0_i32, %c0_i32_0 : i32, i32, i32
  }
}

</mosaic_0001>

<bundles_post_ra>
// kernel: convmodel_forward.1
= control target key start
LH: loop header
LB: loop body
LE: loop exit
PB: predicated region body
PF: predicated region fallthrough
CT: control target
= control target key end

     0   :  { %s1408_s0 = inlined_call_operand.hbm [shape: f32[8,1,128], index: 0, kind: input, shape index: {}]   ;;  %s1409_s1 = inlined_call_operand.vmem [shape: f32[72], index: 1, kind: input, shape index: {}]   ;;  %s1410_s2 = inlined_call_operand.vmem [shape: f32[9], index: 2, kind: input, shape index: {}]   ;;  %s1411_s3 = inlined_call_operand.hbm [shape: f32[8,1,128], index: 3, kind: output, shape index: {}]  }
   0x1   :  { %1422 = sst [smem:[#allocation21_spill]] %s1411_s3 }
   0x2   :  { %8 = vsyncpa [#allocation3], 0 }
   0x3   :  { %9 = vsyncpa [#allocation5], 0 }
   0x4   :  { %10 = vsyncpa [#allocation8], 0 }
   0x5   :  { %11 = vsyncpa [#allocation4], 0  ;;  %s998_s12 = smov [#allocation2]   ;;  %s30_s16 = sshll.u32 %s1409_s1, 4  ;;  %s31_s16 = int_to_ptr.vmem [resolvable:$true] %s30_s16 }
   0x6   :  { %s17_s13 = sshll.u32 %s998_s12, 4  ;;  %s922_s19 = scalar_lea.hbm %s1408_s0, 128  ;;  %s18_s13 = int_to_ptr.vmem [resolvable:$true] %s17_s13 }
   0x7   :  { %p923_p0 = scmp.ne.s32.totalorder %s1408_s0, %s922_s19  ;;  %p926_p1 = scmp.lt.u32.totalorder %s922_s19, %s1408_s0 }
   0x9   :  { %p928_p2 = pnand %p926_p1, %p923_p0 }
   0xb   :  { %931 = shalt.err (!%p928_p2)
}
   0xc   :  { %s932_s24 = scalar_lea.vmem %s18_s13, 128  ;;  %p937_p4 = scmp.lt.s32.totalorder %s18_s13, %s18_s13 }
   0xd   :  { %p933_p3 = scmp.ne.s32.totalorder %s18_s13, %s932_s24  ;;  %p938_p5 = scmp.lt.s32.totalorder %s932_s24, %s932_s24 }
   0xf   :  { %p939_p6 = por %p938_p5, %p937_p4 }
  0x11   :  { %p940_p7 = pnand %p939_p6, %p933_p3 }
  0x13   :  { %943 = shalt.err (!%p940_p7)
}
  0x14   :  { %s1412_s1 = smov 16   ;;  %s1413_s25 = smov 1  }
  0x15   :  { %23 = dma.hbm_to_vmem [thread:$0]  %s1408_s0, 128, %s18_s13, [#allocation3], %s1412_s1, %s1412_s1, %s1413_s25  }
  0x16   :  { %s944_s28 = scalar_lea.vmem %s31_s16, 16  ;;  %p949_p9 = scmp.lt.s32.totalorder %s31_s16, %s31_s16 }
  0x17   :  { %p945_p8 = scmp.ne.s32.totalorder %s31_s16, %s944_s28  ;;  %p950_p10 = scmp.lt.s32.totalorder %s944_s28, %s944_s28 }
  0x19   :  { %p951_p11 = por %p950_p10, %p949_p9 }
  0x1b   :  { %p952_p12 = pnand %p951_p11, %p945_p8 }
  0x1d   :  { %955 = shalt.err (!%p952_p12)
}
  0x1e   :  { %s1001_s29 = smov [#allocation6]   ;;  %s40_s5 = sshll.u32 %s1410_s2, 4  ;;  %s41_s5 = int_to_ptr.vmem [resolvable:$true] %s40_s5 }
  0x1f   :  { %33 = dma.vmem_to_smem %s31_s16, 16, %s1001_s29, [#allocation5]  }
  0x20   :  { %s956_s6 = scalar_lea.vmem %s41_s5, 16  ;;  %p961_p0 = scmp.lt.s32.totalorder %s41_s5, %s41_s5 }
  0x21   :  { %p957_p13 = scmp.ne.s32.totalorder %s41_s5, %s956_s6  ;;  %p962_p1 = scmp.lt.s32.totalorder %s956_s6, %s956_s6 }
  0x23   :  { %p963_p2 = por %p962_p1, %p961_p0 }
  0x25   :  { %p964_p3 = pnand %p963_p2, %p957_p13 }
  0x27   :  { %967 = shalt.err (!%p964_p3)
}
  0x28   :  { %s1002_s0 = smov [#allocation7]  }
  0x29   :  { %43 = dma.vmem_to_smem %s41_s5, 16, %s1002_s0, [#allocation8]  }
  0x2a   :  { %990 = dma.done.wait [#allocation3], 128  }
  0x2b   :  { %991 = vsyncadd [#allocation3], 4294967168 }
  0x2c   :  { %992 = dma.done.wait [#allocation5], 16  }
  0x2d   :  { %993 = vsyncadd [#allocation5], 4294967280 }
  0x2e   :  { %994 = dma.done.wait [#allocation8], 16  }
  0x2f   :  { %995 = vsyncadd [#allocation8], 4294967280 }
  0x30   :  { %53 = sfence }
  0x31   :  { %v1047_v0 = vld [vmem:[#allocation2] sm:$0x1]  ;;  %v1049_v1 = vld [vmem:[#allocation2 + $0x1] sm:$0x1]  ;;  %v1051_v2 = vld [vmem:[#allocation2 + $0x2] sm:$0x1]  ;;  %v77_v3 = vlaneseq }
  0x32   :  { %v1053_v4 = vld [vmem:[#allocation2 + $0x3] sm:$0x1]  ;;  %v1055_v5 = vld [vmem:[#allocation2 + $0x4] sm:$0x1]  ;;  %v1057_v6 = vld [vmem:[#allocation2 + $0x5] sm:$0x1]  ;;  %v70_v12 = vcombine.low %v1047_v0, %v1049_v1 }
  0x33   :  { %v1059_v7 = vld [vmem:[#allocation2 + $0x6] sm:$0x1]  ;;  %v1061_v8 = vld [vmem:[#allocation2 + $0x7] sm:$0x1]  ;;  %v1003_v9 = vmov 1966171168   ;;  %v71_v13 = vcombine.low %v1051_v2, %v1053_v4  ;;  %v72_v14 = vcombine.low %v1055_v5, %v1057_v6 }
  0x34   :  { %v75_v10 = vunpack.c.l.s4 %v1003_v9  ;;  %v78_v11 = vshrl.u32 %v77_v3, 7  ;;  %s815_s2 = sld [smem:[#allocation6 + $0x1]]  ;;  %v73_v15 = vcombine.low %v1059_v7, %v1061_v8  ;;  %s818_s7 = sld [smem:[#allocation6 + $0x4]] }
  0x35   :  { %s1083_s8 = sld [smem:[#allocation6 + $0x7]]  ;;  %s1102_s9 = sld [smem:[#allocation6 + $0xa]] }
  0x36   :  { %v76_v16 = vunpack.c.0.s8 %v75_v10  ;;  %s1415_s10 = smov 127   ;;  %s124_s11 = sld [smem:[#allocation6]] }
  0x37   :  { %s817_s12 = sld [smem:[#allocation6 + $0x3]]  ;;  %s821_s13 = sld [smem:[#allocation6 + $0x6]] }
  0x38   :  { %v1071_v17 = vsub.s32 %v76_v16, %v78_v11  ;;  %s816_s14 = sld [smem:[#allocation6 + $0x2]]  ;;  %s819_s15 = sld [smem:[#allocation6 + $0x5]] }
  0x39   :  { %s823_s16 = sld [smem:[#allocation6 + $0x8]]  ;;  %s825_s17 = sld [smem:[#allocation6 + $0x9]] }
  0x3a   :  { %v80_v18 = vrot.slane %v70_v12, %v1071_v17  ;;  %v87_v19 = vrot.slane %v71_v13, %v1071_v17  ;;  %v94_v20 = vrot.slane %v72_v14, %v1071_v17  ;;  %v101_v21 = vrot.slane %v73_v15, %v1071_v17  ;;  %s827_s18 = sld [smem:[#allocation6 + $0xb]]  ;;  %s200_s19 = sld [smem:[#allocation7]] }
  0x3b   :  { %v128_v22 = vstv %s815_s2  ;;  %v208_v38 = vstv %s818_s7  ;;  %v288_v61 = vstv %s1083_s8  ;;  %s820_s20 = sld [smem:[#allocation7 + $0x1]]  ;;  %s824_s21 = sld [smem:[#allocation7 + $0x2]] }
  0x3c   :  { %v102_v23 = vcombine.low %v80_v18, %v87_v19  ;;  %v103_v24 = vcombine.low %v94_v20, %v101_v21  ;;  %v129_v25 = vmul.f32 %v128_v22, %v1047_v0  ;;  %v130_v26 = vmul.f32 %v128_v22, %v1049_v1  ;;  %s828_s22 = sld [smem:[#allocation7 + $0x3]]  ;;  %s1179_s23 = sld [smem:[#allocation6 + $0xd]] }
  0x3d   :  { %v131_v27 = vmul.f32 %v128_v22, %v1051_v2  ;;  %v132_v28 = vmul.f32 %v128_v22, %v1053_v4  ;;  %v133_v29 = vmul.f32 %v128_v22, %v1055_v5  ;;  %v134_v30 = vmul.f32 %v128_v22, %v1057_v6  ;;  %s1181_s24 = sld [smem:[#allocation6 + $0x19]]  ;;  %s1183_s26 = sld [smem:[#allocation6 + $0x25]] }
  0x3e   :  { %v110_v31 = vrot.slane %v102_v23, %v1071_v17  ;;  %v117_v32 = vrot.slane %v103_v24, %v1071_v17  ;;  %v135_v33 = vmul.f32 %v128_v22, %v1059_v7  ;;  %v136_v34 = vmul.f32 %v128_v22, %v1061_v8  ;;  %s1185_s27 = sld [smem:[#allocation6 + $0x31]]  ;;  %s1187_s28 = sld [smem:[#allocation6 + $0x10]] }
  0x3f   :  { %v145_v35 = vcombine.low %v129_v25, %v130_v26  ;;  %v146_v36 = vcombine.low %v131_v27, %v132_v28  ;;  %v147_v37 = vcombine.low %v133_v29, %v134_v30  ;;  %v209_v41 = vmul.f32 %v208_v38, %v1047_v0  ;;  %s1189_s29 = sld [smem:[#allocation6 + $0x1c]]  ;;  %s1191_s30 = sld [smem:[#allocation6 + $0x28]] }
  0x40   :  { %v118_v39 = vcombine.low %v110_v31, %v117_v32  ;;  %v148_v40 = vcombine.low %v135_v33, %v136_v34  ;;  %v210_v42 = vmul.f32 %v208_v38, %v1049_v1  ;;  %v211_v46 = vmul.f32 %v208_v38, %v1051_v2  ;;  %s1193_s4 = sld [smem:[#allocation6 + $0x34]]  ;;  %s1195_s5 = sld [smem:[#allocation6 + $0x13]] }
  0x41   :  { %v155_v43 = vrot.slane %v145_v35, %v1071_v17  ;;  %v162_v44 = vrot.slane %v146_v36, %v1071_v17  ;;  %v169_v45 = vrot.slane %v147_v37, %v1071_v17  ;;  %v212_v48 = vmul.f32 %v208_v38, %v1053_v4  ;;  %s1197_s6 = sld [smem:[#allocation6 + $0x1f]]  ;;  %s1199_s0 = sld [smem:[#allocation6 + $0x2b]] }
  0x42   :  { %120 = vrot.lane.b32.xlu0 %v118_v39, %s1413_s25  ;;  %v176_v47 = vrot.slane %v148_v40, %v1071_v17  ;;  %v213_v49 = vmul.f32 %v208_v38, %v1055_v5  ;;  %v214_v50 = vmul.f32 %v208_v38, %v1057_v6  ;;  %v215_v52 = vmul.f32 %v208_v38, %v1059_v7  ;;  %s1201_s2 = sld [smem:[#allocation6 + $0x37]]  ;;  %s1203_s7 = sld [smem:[#allocation6 + $0x16]] }
  0x43   :  { %v177_v51 = vcombine.low %v155_v43, %v162_v44  ;;  %v216_v53 = vmul.f32 %v208_v38, %v1061_v8  ;;  %v225_v54 = vcombine.low %v209_v41, %v210_v42  ;;  %v226_v56 = vcombine.low %v211_v46, %v212_v48  ;;  %s1205_s8 = sld [smem:[#allocation6 + $0x22]]  ;;  %s1233_s1 = sld [smem:[#allocation6 + $0x36]] }
  0x44   :  { %v178_v55 = vcombine.low %v169_v45, %v176_v47  ;;  %v227_v57 = vcombine.low %v213_v49, %v214_v50  ;;  %v289_v9 = vmul.f32 %v288_v61, %v1047_v0  ;;  %v290_v11 = vmul.f32 %v288_v61, %v1049_v1  ;;  %s1239_s3 = sld [smem:[#allocation6 + $0x26]] }
  0x45   :  { %v1105_v58 = vrot.slane %v177_v51, %v1071_v17  ;;  %v228_v59 = vcombine.low %v215_v52, %v216_v53  ;;  %v235_v60 = vrot.slane %v225_v54, %v1071_v17  ;;  %v242_v63 = vrot.slane %v226_v56, %v1071_v17 }
  0x46   :  { %122 = vrot.lane.b32.xlu0 %v118_v39, %s1415_s10  ;;  %v1111_v62 = vrot.slane %v178_v55, %v1071_v17  ;;  %v249_v3 = vrot.slane %v227_v57, %v1071_v17  ;;  %v291_v12 = vmul.f32 %v288_v61, %v1051_v2  ;;  %v292_v13 = vmul.f32 %v288_v61, %v1053_v4  ;;  %1423 = sst [smem:[#allocation14_spill]] %s1195_s5 }
  0x47   :  { %v256_v10 = vrot.slane %v228_v59, %v1071_v17  ;;  %v257_v15 = vcombine.low %v235_v60, %v242_v63  ;;  %v293_v16 = vmul.f32 %v288_v61, %v1055_v5  ;;  %v294_v18 = vmul.f32 %v288_v61, %v1057_v6 }
  0x48   :  { %v193_v14 = vcombine.low %v1105_v58, %v1111_v62  ;;  %v295_v20 = vmul.f32 %v288_v61, %v1059_v7  ;;  %v296_v21 = vmul.f32 %v288_v61, %v1061_v8  ;;  %v305_v22 = vcombine.low %v289_v9, %v290_v11 }
  0x49   :  { %v258_v19 = vcombine.low %v249_v3, %v256_v10  ;;  %v1127_v23 = vrot.slane %v257_v15, %v1071_v17  ;;  %v306_v24 = vcombine.low %v291_v12, %v292_v13  ;;  %v307_v25 = vcombine.low %v293_v16, %v294_v18 }
  0x4a   :  { %v308_v27 = vcombine.low %v295_v20, %v296_v21  ;;  %v315_v28 = vrot.slane %v305_v22, %v1071_v17  ;;  %v368_v29 = vstv %s1102_s9  ;;  %v125_v52 = vstv %s124_s11  ;;  %s1207_s9 = sld [smem:[#allocation6 + $0x2e]]  ;;  %s1209_s11 = sld [smem:[#allocation6 + $0x3a]] }
  0x4b   :  { %v272_v26 = vrot.slane %v258_v19, %v1071_v17  ;;  %v322_v30 = vrot.slane %v306_v24, %v1071_v17  ;;  %v329_v31 = vrot.slane %v307_v25, %v1071_v17  ;;  %v369_v32 = vmul.f32 %v368_v29, %v1047_v0 }
  0x4c   :  { %v370_v33 = vmul.f32 %v368_v29, %v1049_v1  ;;  %v336_v35 = vrot.slane %v308_v27, %v1071_v17  ;;  %v371_v36 = vmul.f32 %v368_v29, %v1051_v2  ;;  %v372_v37 = vmul.f32 %v368_v29, %v1053_v4 }
  0x4d   :  { %v273_v34 = vcombine.low %v1127_v23, %v272_v26  ;;  %v337_v38 = vcombine.low %v315_v28, %v322_v30  ;;  %v373_v39 = vmul.f32 %v368_v29, %v1055_v5  ;;  %v374_v40 = vmul.f32 %v368_v29, %v1057_v6 }
  0x4e   :  { %v375_v41 = vmul.f32 %v368_v29, %v1059_v7  ;;  %v338_v42 = vcombine.low %v329_v31, %v336_v35  ;;  %v376_v0 = vmul.f32 %v368_v29, %v1061_v8  ;;  %v385_v43 = vcombine.low %v369_v32, %v370_v33 }
  0x4f   :  { %v386_v1 = vcombine.low %v371_v36, %v372_v37  ;;  %v345_v44 = vrot.slane %v337_v38, %v1071_v17  ;;  %v387_v45 = vcombine.low %v373_v39, %v374_v40  ;;  %v205_v53 = vstv %s817_s12  ;;  %s1211_s12 = sld [smem:[#allocation6 + $0xf]] }
  0x50   :  { %v352_v46 = vrot.slane %v338_v42, %v1071_v17  ;;  %v388_v2 = vcombine.low %v375_v41, %v376_v0  ;;  %v395_v4 = vrot.slane %v385_v43, %v1071_v17  ;;  %v285_v54 = vstv %s821_s13  ;;  %s1213_s13 = sld [smem:[#allocation6 + $0x1b]] }
  0x51   :  { %v402_v47 = vrot.slane %v386_v1, %v1071_v17  ;;  %v409_v5 = vrot.slane %v387_v45, %v1071_v17  ;;  %v197_v60 = vstv %s816_s14  ;;  %v277_v61 = vstv %s819_s15  ;;  %s1215_s14 = sld [smem:[#allocation6 + $0x27]]  ;;  %s1217_s15 = sld [smem:[#allocation6 + $0x33]] }
  0x52   :  { %v353_v6 = vcombine.low %v345_v44, %v352_v46  ;;  %v416_v7 = vrot.slane %v388_v2, %v1071_v17  ;;  %v357_v63 = vstv %s823_s16  ;;  %v365_v3 = vstv %s825_s17  ;;  %s1219_s16 = sld [smem:[#allocation6 + $0xc]]  ;;  %s1221_s17 = sld [smem:[#allocation6 + $0x18]] }
  0x53   :  { %v417_v48 = vcombine.low %v395_v4, %v402_v47  ;;  %v437_v10 = vstv %s827_s18  ;;  %v201_v20 = vstv %s200_s19  ;;  %v281_v21 = vstv %s820_s20  ;;  %s1223_s18 = sld [smem:[#allocation6 + $0x24]]  ;;  %s1225_s19 = sld [smem:[#allocation6 + $0x30]] }
  0x54   :  { %v418_v49 = vcombine.low %v409_v5, %v416_v7  ;;  %v361_v26 = vstv %s824_s21  ;;  %v441_v29 = vstv %s828_s22  ;;  %s1227_s20 = sld [smem:[#allocation6 + $0x12]]  ;;  %s1229_s21 = sld [smem:[#allocation6 + $0x1e]]  ;;  %v464_v35 = vstv %s1179_s23 }
  0x55   :  { %v425_v8 = vrot.slane %v417_v48, %v1071_v17  ;;  %s1231_s22 = sld [smem:[#allocation6 + $0x2a]]  ;;  %v515_v36 = vstv %s1181_s24  ;;  %v566_v37 = vstv %s1183_s26  ;;  %v617_v38 = vstv %s1185_s27  ;;  %s1259_s23 = sld [smem:[#allocation6 + $0x1d]] }
  0x56   :  { %v432_v50 = vrot.slane %v418_v49, %v1071_v17  ;;  %v476_v39 = vstv %s1187_s28  ;;  %v527_v40 = vstv %s1189_s29  ;;  %v578_v41 = vstv %s1191_s30  ;;  %s1271_s30 = sld [smem:[#allocation6 + $0x29]] }
  0x57   :  { %v629_v42 = vstv %s1193_s4  ;;  %v488_v0 = vstv %s1195_s5  ;;  %v539_v43 = vstv %s1197_s6  ;;  %v590_v1 = vstv %s1199_s0  ;;  %s1346_s4 = sld [smem:[#allocation7 + $0x4]]  ;;  %s1351_s6 = sld [smem:[#allocation7 + $0x5]] }
  0x58   :  { %v433_v51 = vcombine.low %v425_v8, %v432_v50  ;;  %v641_v44 = vstv %s1201_s2  ;;  %v500_v45 = vstv %s1203_s7  ;;  %v551_v46 = vstv %s1205_s8  ;;  %s1361_s0 = sld [smem:[#allocation6 + $0x3b]]  ;;  %s1438_s2 = smov 1  }
  0x59   :  { %1424 = sst [smem:[#allocation15_spill]] %s1225_s19  ;;  %s1241_s19 = sld [smem:[#allocation6 + $0x32]]  ;;  %v472_v2 = vstv %s1211_s12  ;;  %v523_v4 = vstv %s1213_s13  ;;  %v602_v47 = vstv %s1207_s9  ;;  %v653_v5 = vstv %s1209_s11 }
  0x5a   :  { %1425 = sst [smem:[#allocation16_spill]] %s1227_s20  ;;  %s1243_s20 = sld [smem:[#allocation6 + $0x15]]  ;;  %v625_v7 = vstv %s1217_s15  ;;  %v461_v48 = vstv %s1219_s16  ;;  %v512_v49 = vstv %s1221_s17  ;;  %v563_v8 = vstv %s1223_s18 }
  0x5b   :  { %1426 = sst [smem:[#allocation17_spill]] %s1229_s21  ;;  %s1245_s21 = sld [smem:[#allocation6 + $0x21]] }
  0x5c   :  { %s1430_s24 = sld [smem:[#allocation15_spill]]  ;;  %s1431_s26 = sld [smem:[#allocation16_spill]] }
  0x5d   :  { %s1432_s27 = sld [smem:[#allocation17_spill]]  ;;  %s1295_s12 = sld [smem:[#allocation6 + $0x35]] }
  0x5e   :  { %s1297_s13 = sld [smem:[#allocation6 + $0x14]]  ;;  %s1311_s16 = sld [smem:[#allocation6 + $0x38]] }
  0x5f   :  { %s1321_s17 = sld [smem:[#allocation6 + $0x17]]  ;;  %s1323_s18 = sld [smem:[#allocation6 + $0x23]] }
  0x60   :  { %1429 = sst [smem:[#allocation20_spill]] %s1243_s20  ;;  %s1256_s20 = sld [smem:[#allocation6 + $0x11]] }
  0x61   :  { %s1435_s5 = sld [smem:[#allocation20_spill]]  ;;  %s881_s7 = sld [smem:[#allocation6 + $0x3c]] }
  0x62   :  { %v614_v50 = vstv %s1430_s24  ;;  %s882_s8 = sld [smem:[#allocation6 + $0x3d]]  ;;  %s883_s9 = sld [smem:[#allocation6 + $0x3e]] }
  0x63   :  { %s884_s11 = sld [smem:[#allocation6 + $0x3f]]  ;;  %s890_s24 = sld [smem:[#allocation6 + $0x45]] }
  0xb4   :  { %v121_v55 = vpop.permute.xlu0 %120 }
  0xb5   :  { %v126_v56 = vmul.f32 %v125_v52, %v121_v55  ;;  %v206_v57 = vmul.f32 %v205_v53, %v121_v55  ;;  %v286_v59 = vmul.f32 %v285_v54, %v121_v55  ;;  %v366_v19 = vmul.f32 %v365_v3, %v121_v55 }
  0xb6   :  { %v535_v52 = vstv %s1432_s27  ;;  %v586_v53 = vstv %s1231_s22  ;;  %v637_v54 = vstv %s1233_s1  ;;  %s1349_s1 = sld [smem:[#allocation6 + $0x2f]]  ;;  %s888_s22 = sld [smem:[#allocation6 + $0x43]] }
  0xb7   :  { %v195_v9 = vadd.f32 %v193_v14, %v126_v56  ;;  %v275_v12 = vadd.f32 %v273_v34, %v206_v57  ;;  %v355_v18 = vadd.f32 %v353_v6, %v286_v59  ;;  %v435_v58 = vadd.f32 %v433_v51, %v366_v19  ;;  %s892_s27 = sld [smem:[#allocation6 + $0x47]] }
  0xb8   :  { %v123_v11 = vpop.permute.xlu0 %122  ;;  %v574_v6 = vstv %s1215_s14  ;;  %v484_v51 = vstv %s1431_s26  ;;  %v570_v57 = vstv %s1239_s3  ;;  %v621_v59 = vstv %s1241_s19  ;;  %s1303_s3 = sld [smem:[#allocation6 + $0x20]]  ;;  %s1305_s14 = sld [smem:[#allocation6 + $0x2c]] }
  0xb9   :  { %v198_v13 = vmul.f32 %v197_v60, %v123_v11  ;;  %v278_v15 = vmul.f32 %v277_v61, %v123_v11  ;;  %v358_v16 = vmul.f32 %v357_v63, %v123_v11  ;;  %v438_v25 = vmul.f32 %v437_v10, %v123_v11  ;;  %s885_s19 = sld [smem:[#allocation6 + $0x40]]  ;;  %s891_s26 = sld [smem:[#allocation6 + $0x46]] }
  0xba   :  { %v496_v60 = vstv %s1435_s5  ;;  %v547_v61 = vstv %s1245_s21  ;;  %v480_v10 = vstv %s1256_s20  ;;  %v531_v11 = vstv %s1259_s23  ;;  %s1437_s5 = smov 127   ;;  %s886_s20 = sld [smem:[#allocation6 + $0x41]] }
  0xbb   :  { %v199_v22 = vadd.f32 %v198_v13, %v195_v9  ;;  %v279_v23 = vadd.f32 %v278_v15, %v275_v12  ;;  %v359_v24 = vadd.f32 %v358_v16, %v355_v18  ;;  %v439_v14 = vadd.f32 %v438_v25, %v435_v58  ;;  %s887_s21 = sld [smem:[#allocation6 + $0x42]]  ;;  %s889_s23 = sld [smem:[#allocation6 + $0x44]] }
  0xbd   :  { %v202_v27 = vadd.f32 %v201_v20, %v199_v22  ;;  %v282_v28 = vadd.f32 %v281_v21, %v279_v23  ;;  %v362_v62 = vadd.f32 %v361_v26, %v359_v24  ;;  %v442_v30 = vadd.f32 %v441_v29, %v439_v14 }
  0xbe   :  { %v582_v26 = vstv %s1271_s30 }
  0xbf   :  { %906 = vtanh.f32 %v202_v27 }
  0xc0   :  { %908 = vtanh.f32 %v282_v28 }
  0xc1   :  { %910 = vtanh.f32 %v362_v62 }
  0xc2   :  { %912 = vtanh.f32 %v442_v30 }
  0xc9   :  { %v1155_v31 = vpop.eup %906 }
  0xca   :  { %v1157_v32 = vpop.eup %908  ;;  %444 = vrot.lane.b32.xlu1 %v1155_v31, %s1413_s25  ;;  %v465_v18 = vmul.f32 %v1155_v31, %v464_v35  ;;  %v516_v19 = vmul.f32 %v1155_v31, %v515_v36  ;;  %v567_v20 = vmul.f32 %v1155_v31, %v566_v37  ;;  %v618_v21 = vmul.f32 %v1155_v31, %v617_v38 }
  0xcb   :  { %448 = vrot.lane.b32.xlu0 %v1157_v32, %s1413_s25  ;;  %v1163_v33 = vpop.eup %910  ;;  %v477_v23 = vmul.f32 %v1157_v32, %v476_v39  ;;  %v528_v24 = vmul.f32 %v1157_v32, %v527_v40  ;;  %v579_v25 = vmul.f32 %v1157_v32, %v578_v41 }
  0xcc   :  { %v1169_v34 = vpop.eup %912 }
  0xce   :  { %446 = vrot.lane.b32.xlu1 %v1155_v31, %s1415_s10 }
  0xcf   :  { %452 = vrot.lane.b32.xlu0 %v1163_v33, %s1413_s25 }
  0xd2   :  { %450 = vrot.lane.b32.xlu1 %v1157_v32, %s1415_s10 }
  0xd3   :  { %456 = vrot.lane.b32.xlu0 %v1169_v34, %s1413_s25  ;;  %s1235_s25 = sld [smem:[#allocation6 + $0xe]] }
  0xd6   :  { %454 = vrot.lane.b32.xlu1 %v1163_v33, %s1415_s10 }
  0xd9   :  { %1427 = sst [smem:[#allocation18_spill]] %s1235_s25  ;;  %s1249_s25 = sld [smem:[#allocation6 + $0x2d]] }
  0xda   :  { %458 = vrot.lane.b32.xlu1 %v1169_v34, %s1415_s10  ;;  %s1237_s10 = sld [smem:[#allocation6 + $0x1a]]  ;;  %s1433_s28 = sld [smem:[#allocation18_spill]] }
  0xdf   :  { %v598_v3 = vstv %s1249_s25  ;;  %s867_s25 = sld [smem:[#allocation7 + $0x6]] }
  0xe0   :  { %1428 = sst [smem:[#allocation19_spill]] %s1237_s10  ;;  %s1251_s10 = sld [smem:[#allocation6 + $0x39]]  ;;  %v468_v55 = vstv %s1433_s28 }
  0xe1   :  { %s1434_s29 = sld [smem:[#allocation19_spill]]  ;;  %s893_s28 = sld [smem:[#allocation7 + $0x8]] }
  0xe6   :  { %v649_v9 = vstv %s1251_s10  ;;  %s880_s10 = sld [smem:[#allocation7 + $0x7]] }
  0xe7   :  { %v519_v56 = vstv %s1434_s29  ;;  %s1005_s29 = smov [#allocation9]  }
  0xe8   :  { %s801_s30 = sshll.u32 %s1005_s29, 4  ;;  %s802_s30 = int_to_ptr.vmem [resolvable:$true] %s801_s30 }
  0xe9   :  { %p973_p5 = scmp.lt.s32.totalorder %s802_s30, %s802_s30 }
 0x13c   :  { %v445_v63 = vpop.permute.xlu1 %444 }
 0x13d   :  { %v462_v12 = vmul.f32 %v461_v48, %v445_v63  ;;  %v513_v13 = vmul.f32 %v512_v49, %v445_v63  ;;  %v564_v15 = vmul.f32 %v563_v8, %v445_v63  ;;  %v615_v16 = vmul.f32 %v614_v50, %v445_v63  ;;  %v449_v22 = vpop.permute.xlu0 %448 }
 0x13e   :  { %v473_v36 = vmul.f32 %v472_v2, %v449_v22  ;;  %v524_v37 = vmul.f32 %v523_v4, %v449_v22  ;;  %v575_v38 = vmul.f32 %v574_v6, %v449_v22  ;;  %v626_v39 = vmul.f32 %v625_v7, %v449_v22 }
 0x13f   :  { %v466_v27 = vadd.f32 %v465_v18, %v462_v12  ;;  %v517_v28 = vadd.f32 %v516_v19, %v513_v13  ;;  %v568_v58 = vadd.f32 %v567_v20, %v564_v15  ;;  %v619_v62 = vadd.f32 %v618_v21, %v615_v16 }
 0x140   :  { %v447_v14 = vpop.permute.xlu1 %446  ;;  %v630_v8 = vmul.f32 %v1157_v32, %v629_v42  ;;  %v633_v50 = vstv %s1295_s12  ;;  %v489_v2 = vmul.f32 %v1163_v33, %v488_v0  ;;  %v492_v4 = vstv %s1297_s13  ;;  %s968_s12 = scalar_lea.vmem %s802_s30, 128 }
 0x141   :  { %v469_v29 = vmul.f32 %v468_v55, %v447_v14  ;;  %v520_v30 = vmul.f32 %v519_v56, %v447_v14  ;;  %v571_v31 = vmul.f32 %v570_v57, %v447_v14  ;;  %v622_v35 = vmul.f32 %v621_v59, %v447_v14  ;;  %v453_v59 = vpop.permute.xlu0 %452  ;;  %p969_p4 = scmp.ne.s32.totalorder %s802_s30, %s968_s12  ;;  %p974_p6 = scmp.lt.s32.totalorder %s968_s12, %s968_s12 }
 0x142   :  { %v540_v32 = vmul.f32 %v1163_v33, %v539_v43  ;;  %v543_v42 = vstv %s1303_s3  ;;  %v591_v0 = vmul.f32 %v1163_v33, %v590_v1  ;;  %v594_v63 = vstv %s1305_s14 }
 0x143   :  { %v470_v40 = vadd.f32 %v469_v29, %v466_v27  ;;  %v521_v41 = vadd.f32 %v520_v30, %v517_v28  ;;  %v572_v48 = vadd.f32 %v571_v31, %v568_v58  ;;  %v623_v49 = vadd.f32 %v622_v35, %v619_v62  ;;  %p975_p7 = por %p974_p6, %p973_p5 }
 0x144   :  { %v451_v55 = vpop.permute.xlu1 %450  ;;  %v485_v22 = vmul.f32 %v484_v51, %v453_v59  ;;  %v536_v43 = vmul.f32 %v535_v52, %v453_v59  ;;  %v587_v1 = vmul.f32 %v586_v53, %v453_v59  ;;  %v645_v62 = vstv %s1311_s16 }
 0x145   :  { %v474_v6 = vadd.f32 %v473_v36, %v470_v40  ;;  %v525_v7 = vadd.f32 %v524_v37, %v521_v41  ;;  %v576_v56 = vadd.f32 %v575_v38, %v572_v48  ;;  %v627_v57 = vadd.f32 %v626_v39, %v623_v49  ;;  %v457_v51 = vpop.permute.xlu0 %456  ;;  %p976_p8 = pnand %p975_p7, %p969_p4 }
 0x146   :  { %v481_v13 = vmul.f32 %v480_v10, %v451_v55  ;;  %v532_v16 = vmul.f32 %v531_v11, %v451_v55  ;;  %v583_v19 = vmul.f32 %v582_v26, %v451_v55  ;;  %v634_v21 = vmul.f32 %v633_v50, %v451_v55 }
 0x147   :  { %v478_v12 = vadd.f32 %v477_v23, %v474_v6  ;;  %v529_v15 = vadd.f32 %v528_v24, %v525_v7  ;;  %v580_v18 = vadd.f32 %v579_v25, %v576_v56  ;;  %v631_v20 = vadd.f32 %v630_v8, %v627_v57 }
 0x148   :  { %v638_v10 = vmul.f32 %v637_v54, %v453_v59  ;;  %v455_v24 = vpop.permute.xlu1 %454  ;;  %v642_v26 = vmul.f32 %v1163_v33, %v641_v44  ;;  %v504_v29 = vstv %s1321_s17  ;;  %v555_v53 = vstv %s1323_s18 }
 0x149   :  { %v482_v27 = vadd.f32 %v481_v13, %v478_v12  ;;  %v533_v28 = vadd.f32 %v532_v16, %v529_v15  ;;  %v584_v23 = vadd.f32 %v583_v19, %v580_v18  ;;  %v635_v11 = vadd.f32 %v634_v21, %v631_v20 }
 0x14a   :  { %v493_v30 = vmul.f32 %v492_v4, %v455_v24  ;;  %v544_v35 = vmul.f32 %v543_v42, %v455_v24  ;;  %v595_v33 = vmul.f32 %v594_v63, %v455_v24  ;;  %v646_v37 = vmul.f32 %v645_v62, %v455_v24 }
 0x14b   :  { %v486_v25 = vadd.f32 %v485_v22, %v482_v27  ;;  %v537_v58 = vadd.f32 %v536_v43, %v533_v28  ;;  %v588_v14 = vadd.f32 %v587_v1, %v584_v23  ;;  %v639_v52 = vadd.f32 %v638_v10, %v635_v11 }
 0x14c   :  { %v497_v38 = vmul.f32 %v496_v60, %v457_v51  ;;  %v548_v39 = vmul.f32 %v547_v61, %v457_v51  ;;  %v599_v48 = vmul.f32 %v598_v3, %v457_v51  ;;  %v650_v49 = vmul.f32 %v649_v9, %v457_v51  ;;  %v459_v55 = vpop.permute.xlu1 %458 }
 0x14d   :  { %v490_v54 = vadd.f32 %v489_v2, %v486_v25  ;;  %v541_v31 = vadd.f32 %v540_v32, %v537_v58  ;;  %v592_v36 = vadd.f32 %v591_v0, %v588_v14  ;;  %v643_v44 = vadd.f32 %v642_v26, %v639_v52 }
 0x14e   :  { %v501_v60 = vmul.f32 %v1169_v34, %v500_v45  ;;  %v552_v61 = vmul.f32 %v1169_v34, %v551_v46  ;;  %v603_v9 = vmul.f32 %v1169_v34, %v602_v47  ;;  %v654_v7 = vmul.f32 %v1169_v34, %v653_v5 }
 0x14f   :  { %v494_v40 = vadd.f32 %v493_v30, %v490_v54  ;;  %v545_v41 = vadd.f32 %v544_v35, %v541_v31  ;;  %v596_v8 = vadd.f32 %v595_v33, %v592_v36  ;;  %v647_v50 = vadd.f32 %v646_v37, %v643_v44 }
 0x150   :  { %v505_v57 = vmul.f32 %v504_v29, %v459_v55  ;;  %v556_v32 = vmul.f32 %v555_v53, %v459_v55  ;;  %v508_v42 = vstv %s1346_s4  ;;  %v606_v45 = vstv %s1349_s1 }
 0x151   :  { %v498_v2 = vadd.f32 %v497_v38, %v494_v40  ;;  %v549_v4 = vadd.f32 %v548_v39, %v545_v41  ;;  %v600_v6 = vadd.f32 %v599_v48, %v596_v8  ;;  %v651_v3 = vadd.f32 %v650_v49, %v647_v50 }
 0x152   :  { %v559_v13 = vstv %s1351_s6  ;;  %v607_v16 = vmul.f32 %v606_v45, %v459_v55  ;;  %v657_v47 = vstv %s1361_s0  ;;  %v610_v20 = vstv %s867_s25 }
 0x153   :  { %v502_v56 = vadd.f32 %v501_v60, %v498_v2  ;;  %v553_v59 = vadd.f32 %v552_v61, %v549_v4  ;;  %v604_v0 = vadd.f32 %v603_v9, %v600_v6  ;;  %v655_v63 = vadd.f32 %v654_v7, %v651_v3 }
 0x154   :  { %v658_v34 = vmul.f32 %v657_v47, %v459_v55  ;;  %v661_v22 = vstv %s880_s10  ;;  %v681_v23 = vstv %s881_s7  ;;  %v684_v11 = vstv %s882_s8 }
 0x155   :  { %v506_v46 = vadd.f32 %v505_v57, %v502_v56  ;;  %v557_v12 = vadd.f32 %v556_v32, %v553_v59  ;;  %v608_v19 = vadd.f32 %v607_v16, %v604_v0  ;;  %v688_v24 = vstv %s883_s9 }
 0x156   :  { %v659_v21 = vadd.f32 %v658_v34, %v655_v63  ;;  %v692_v51 = vstv %s884_s11  ;;  %v696_v29 = vstv %s885_s19  ;;  %v700_v31 = vstv %s886_s20 }
 0x157   :  { %v509_v15 = vadd.f32 %v508_v42, %v506_v46  ;;  %v560_v18 = vadd.f32 %v559_v13, %v557_v12  ;;  %v611_v5 = vadd.f32 %v610_v20, %v608_v19  ;;  %v704_v44 = vstv %s887_s21 }
 0x158   :  { %v662_v43 = vadd.f32 %v661_v22, %v659_v21  ;;  %v708_v40 = vstv %s888_s22  ;;  %v712_v49 = vstv %s889_s23  ;;  %v716_v2 = vstv %s890_s24 }
 0x159   :  { %914 = vtanh.f32 %v509_v15  ;;  %v720_v6 = vstv %s891_s26  ;;  %v724_v7 = vstv %s892_s27  ;;  %v728_v45 = vstv %s893_s28 }
 0x15a   :  { %916 = vtanh.f32 %v560_v18 }
 0x15b   :  { %918 = vtanh.f32 %v611_v5 }
 0x15c   :  { %920 = vtanh.f32 %v662_v43 }
 0x163   :  { %v915_v27 = vpop.eup %914 }
 0x164   :  { %666 = vrot.lane.b32.xlu1 %v915_v27, %s1437_s5  ;;  %664 = vrot.lane.b32.xlu0 %v915_v27, %s1438_s2  ;;  %v917_v28 = vpop.eup %916  ;;  %v685_v62 = vmul.f32 %v915_v27, %v684_v11 }
 0x165   :  { %v919_v1 = vpop.eup %918  ;;  %v697_v36 = vmul.f32 %v917_v28, %v696_v29 }
 0x166   :  { %v921_v10 = vpop.eup %920  ;;  %v709_v50 = vmul.f32 %v919_v1, %v708_v40 }
 0x167   :  { %v721_v57 = vmul.f32 %v921_v10, %v720_v6 }
 0x168   :  { %670 = vrot.lane.b32.xlu1 %v917_v28, %s1437_s5  ;;  %668 = vrot.lane.b32.xlu0 %v917_v28, %s1438_s2 }
 0x16c   :  { %674 = vrot.lane.b32.xlu1 %v919_v1, %s1437_s5  ;;  %672 = vrot.lane.b32.xlu0 %v919_v1, %s1438_s2 }
 0x170   :  { %678 = vrot.lane.b32.xlu1 %v921_v10, %s1437_s5  ;;  %676 = vrot.lane.b32.xlu0 %v921_v10, %s1438_s2 }
 0x1d6   :  { %v667_v25 = vpop.permute.xlu1 %666  ;;  %v665_v58 = vpop.permute.xlu0 %664 }
 0x1d7   :  { %v682_v26 = vmul.f32 %v681_v23, %v665_v58  ;;  %v689_v14 = vmul.f32 %v688_v24, %v667_v25 }
 0x1d9   :  { %v686_v52 = vadd.f32 %v685_v62, %v682_v26 }
 0x1da   :  { %v669_v53 = vpop.permute.xlu0 %668  ;;  %v671_v35 = vpop.permute.xlu1 %670 }
 0x1db   :  { %v690_v54 = vadd.f32 %v689_v14, %v686_v52  ;;  %v693_v30 = vmul.f32 %v692_v51, %v669_v53  ;;  %v701_v38 = vmul.f32 %v700_v31, %v671_v35 }
 0x1dd   :  { %v694_v33 = vadd.f32 %v693_v30, %v690_v54 }
 0x1de   :  { %v673_v37 = vpop.permute.xlu0 %672  ;;  %v675_v8 = vpop.permute.xlu1 %674 }
 0x1df   :  { %v698_v39 = vadd.f32 %v697_v36, %v694_v33  ;;  %v705_v48 = vmul.f32 %v704_v44, %v673_v37  ;;  %v713_v60 = vmul.f32 %v712_v49, %v675_v8 }
 0x1e1   :  { %v702_v41 = vadd.f32 %v701_v38, %v698_v39 }
 0x1e2   :  { %v677_v4 = vpop.permute.xlu0 %676  ;;  %v679_v56 = vpop.permute.xlu1 %678 }
 0x1e3   :  { %v706_v55 = vadd.f32 %v705_v48, %v702_v41  ;;  %v717_v9 = vmul.f32 %v716_v2, %v677_v4  ;;  %v725_v32 = vmul.f32 %v724_v7, %v679_v56 }
 0x1e5   :  { %v710_v61 = vadd.f32 %v709_v50, %v706_v55 }
 0x1e7   :  { %v714_v3 = vadd.f32 %v713_v60, %v710_v61 }
 0x1e9   :  { %v718_v59 = vadd.f32 %v717_v9, %v714_v3 }
 0x1eb   :  { %v722_v42 = vadd.f32 %v721_v57, %v718_v59 }
 0x1ed   :  { %v726_v0 = vadd.f32 %v725_v32, %v722_v42 }
 0x1ef   :  { %v729_v63 = vadd.f32 %v728_v45, %v726_v0 }
 0x1f1   :  { %v731_v46 = vcombine.high %v729_v63, %v729_v63  ;;  %v738_v12 = vrot.slane %v729_v63, %v1071_v17 }
 0x1f3   :  { %v745_v13 = vrot.slane %v731_v46, %v1071_v17  ;;  %v746_v15 = vcombine.high %v738_v12, %v738_v12  ;;  %v754_v16 = vrot.slane %v738_v12, %v1071_v17  ;;  %894 = vst.sshfl [vmem:[#allocation9] sm:$0x1 pattern:$0x73625140] %v738_v12 }
 0x1f5   :  { %v747_v47 = vcombine.high %v745_v13, %v745_v13  ;;  %v761_v18 = vrot.slane %v745_v13, %v1071_v17  ;;  %v768_v19 = vrot.slane %v746_v15, %v1071_v17  ;;  %v776_v20 = vcombine.high %v754_v16, %v754_v16  ;;  %895 = vst.sshfl [vmem:[#allocation9 + $0x1] sm:$0x1 pattern:$0x73625140] %v746_v15 }
 0x1f6   :  { %896 = vst.sshfl [vmem:[#allocation9 + $0x4] sm:$0x1 pattern:$0x73625140] %v745_v13 }
 0x1f7   :  { %v775_v34 = vrot.slane %v747_v47, %v1071_v17  ;;  %v777_v5 = vcombine.high %v761_v18, %v761_v18  ;;  %v778_v21 = vcombine.high %v768_v19, %v768_v19  ;;  %790 = vst [vmem:[#allocation9 + $0x2] sm:$0x1] %v776_v20  ;;  %897 = vst.sshfl [vmem:[#allocation9 + $0x5] sm:$0x1 pattern:$0x73625140] %v747_v47 }
 0x1f9   :  { %v779_v22 = vcombine.high %v775_v34, %v775_v34  ;;  %791 = vst [vmem:[#allocation9 + $0x3] sm:$0x1] %v778_v21  ;;  %794 = vst [vmem:[#allocation9 + $0x6] sm:$0x1] %v777_v5 }
 0x1fb   :  { %795 = vst [vmem:[#allocation9 + $0x7] sm:$0x1] %v779_v22 }
 0x1fc   :  { %979 = shalt.err (!%p976_p8)
}
 0x1fd   :  { %s1439_s14 = sld [smem:[#allocation21_spill]] }
 0x203   :  { %s980_s15 = scalar_lea.hbm %s1439_s14, 128 }
 0x204   :  { %p981_p9 = scmp.ne.s32.totalorder %s1439_s14, %s980_s15  ;;  %p984_p10 = scmp.lt.u32.totalorder %s980_s15, %s1439_s14 }
 0x206   :  { %p986_p11 = pnand %p984_p10, %p981_p9 }
 0x208   :  { %989 = shalt.err (!%p986_p11)
}
 0x209   :  { %s1440_s1 = smov 16  }
 0x20a   :  { %807 = dma.vmem_to_hbm [thread:$0]  %s802_s30, 128, %s1439_s14, [#allocation4], %s1440_s1, %s1440_s1, %s1438_s2  }
 0x20b   :  { %996 = dma.done.wait [#allocation4], 128  }
 0x20c   :  { %997 = vsyncadd [#allocation4], 4294967168 }
 0x20d   :  { %811 = vsyncpa [#allocation3], 1 }
 0x20e   :  { %812 = vsyncpa [#allocation4], 1 }
 0x20f   :  { %813 = vsyncpa [#allocation5], 1 }
 0x210   :  { %814 = vsyncpa [#allocation8], 1 }

</bundles_post_ra>
